<compile_context>
chip_gen: v6e
topology: v6e:2x2x1
jax: 0.10.0
libtpu: 0.0.40
codegen_flags: <defaults>
</compile_context>

<pallas_src>
import math

import jax
import jax.numpy as jnp
from jax.experimental import pallas as pl
from jax.experimental.pallas import tpu as pltpu

D_IN, D_HID, D_LAT = 125, 64, 10


def vae_forward_kernel(
    x_ref, eps_ref,
    w1_ref, b1_ref,
    wmu_ref, bmu_ref,
    wlv_ref, blv_ref,
    wd1_ref, bd1_ref,
    wd2_ref, bd2_ref,
    dec_ref, mu_ref, lv_ref,
):
    # Encoder: Linear(125 -> 64) + ReLU.  bf16 MXU matmul, f32 accumulation/elementwise.
    x = x_ref[...].astype(jnp.bfloat16)
    h = jnp.dot(x, w1_ref[...], preferred_element_type=jnp.float32)
    h = jnp.maximum(h + b1_ref[...], 0.0)
    h_bf = h.astype(jnp.bfloat16)

    # mu / logvar heads (64 -> 10).  Real 10-wide outputs: no padded lanes are written.
    mu = jnp.dot(h_bf, wmu_ref[...], preferred_element_type=jnp.float32) + bmu_ref[...]
    lv = jnp.dot(h_bf, wlv_ref[...], preferred_element_type=jnp.float32) + blv_ref[...]

    # Reparameterization: z = mu + eps * exp(0.5 * logvar)   (f32; exp runs on the EUP).
    z = mu + eps_ref[...] * jnp.exp(0.5 * lv)

    # Decoder: Linear(10 -> 64) + ReLU, Linear(64 -> 125).
    hd = jnp.dot(z.astype(jnp.bfloat16), wd1_ref[...],
                 preferred_element_type=jnp.float32)
    hd = jnp.maximum(hd + bd1_ref[...], 0.0)
    dec = jnp.dot(hd.astype(jnp.bfloat16), wd2_ref[...],
                  preferred_element_type=jnp.float32) + bd2_ref[...]

    dec_ref[...] = dec
    mu_ref[...] = mu
    lv_ref[...] = lv


def _round_up(n, m):
    return ((n + m - 1) // m) * m


def _cdiv(a, b):
    return -(-a // b)


def prepare_params(params):
    """One-time parameter prep (do NOT call per forward step): cast weights to bf16
    (MXU-native, half the resident-VMEM/HBM bytes) and biases to f32 row vectors."""
    (w1, b1, wmu, bmu, wlv, blv, wd1, bd1, wd2, bd2) = params

    def w(a):
        return jnp.asarray(a, jnp.bfloat16)

    def b(a):
        return jnp.asarray(a, jnp.float32).reshape(1, -1)

    return (w(w1), b(b1), w(wmu), b(bmu), w(wlv), b(blv),
            w(wd1), b(bd1), w(wd2), b(bd2))


def autoencoder_forward(x, eps, prepared_params, *, batch_tile=None):
    """x: [B, 125] f32, eps: [B, 10] f32 standard-normal noise.
    prepared_params: output of prepare_params(...).
    Returns (decoded [B,125], mu [B,10], logvar [B,10]) as float32."""
    B = x.shape[0]
    (w1, b1, wmu, bmu, wlv, blv, wd1, bd1, wd2, bd2) = prepared_params

    if batch_tile is None:
        # Enough grid steps to keep tiles <= ~2048 rows (double-buffered footprint
        # ~13 MB, fits every generation's scoped VMEM), and at least 2 steps when B
        # allows so dimension_semantics=("parallel",) can use both v7x TensorCores.
        n_steps = max(1, _cdiv(B, 2048))
        if B >= 16:
            n_steps = max(n_steps, 2)
        batch_tile = max(8, _round_up(_cdiv(B, n_steps), 8))
    tb = batch_tile
    B_pad = _round_up(B, tb)
    grid = (B_pad // tb,)

    # Row-pad only when B is ragged w.r.t. the tile.  Feature dims keep their real
    # sizes: no lane padding and no wrapper-side pad/slice HBM round trips.
    if B_pad != B:
        x_in = jnp.zeros((B_pad, D_IN), x.dtype).at[:B].set(x)
        eps_in = jnp.zeros((B_pad, D_LAT), eps.dtype).at[:B].set(eps)
    else:
        x_in, eps_in = x, eps

    def stream(cols):
        return pl.BlockSpec((tb, cols), lambda i: (i, 0))

    def resident(a):
        # Whole (tiny) weight stays in VMEM across all grid steps.
        return pl.BlockSpec(a.shape, lambda i: (0, 0))

    in_specs = [
        stream(D_IN),            # x
        stream(D_LAT),           # eps
        resident(w1), resident(b1),
        resident(wmu), resident(bmu),
        resident(wlv), resident(blv),
        resident(wd1), resident(bd1),
        resident(wd2), resident(bd2),
    ]
    out_specs = (
        stream(D_IN),            # decoded
        stream(D_LAT),           # mu
        stream(D_LAT),           # logvar
    )
    out_shapes = (
        jax.ShapeDtypeStruct((B_pad, D_IN), jnp.float32),
        jax.ShapeDtypeStruct((B_pad, D_LAT), jnp.float32),
        jax.ShapeDtypeStruct((B_pad, D_LAT), jnp.float32),
    )

    macs = D_IN * D_HID + 2 * D_HID * D_LAT + D_LAT * D_HID + D_HID * D_IN
    cost = pl.CostEstimate(
        flops=2 * B_pad * macs,
        transcendentals=B_pad * D_LAT,
        bytes_accessed=B_pad * 4 * (2 * D_IN + 3 * D_LAT)
        + 2 * macs + 4 * (2 * D_HID + 2 * D_LAT + D_IN),
    )

    dec, mu, lv = pl.pallas_call(
        vae_forward_kernel,
        out_shape=out_shapes,
        grid=grid,
        in_specs=in_specs,
        out_specs=out_specs,
        compiler_params=pltpu.CompilerParams(
            dimension_semantics=("parallel",),   # shard batch tiles across TCs (v7x)
            vmem_limit_bytes=32 << 20,           # plenty for <=2048-row tiles, all gens
        ),
        cost_estimate=cost,
    )(x_in, eps_in, w1, b1, wmu, bmu, wlv, blv, wd1, bd1, wd2, bd2)

    if B_pad != B:
        dec, mu, lv = dec[:B], mu[:B], lv[:B]
    return dec, mu, lv


def init_params(key):
    """PyTorch-style Linear init: U(-1/sqrt(fan_in), 1/sqrt(fan_in)).
    Weights stored [in_features, out_features]; biases [1, out_features]."""
    def linear(key, fan_in, fan_out):
        kw, kb = jax.random.split(key)
        bound = 1.0 / math.sqrt(fan_in)
        w = jax.random.uniform(kw, (fan_in, fan_out), jnp.float32, -bound, bound)
        b = jax.random.uniform(kb, (1, fan_out), jnp.float32, -bound, bound)
        return w, b

    k1, k2, k3, k4, k5 = jax.random.split(key, 5)
    w1, b1 = linear(k1, 125, 64)    # encoder Linear(125, 64)
    wmu, bmu = linear(k2, 64, 10)   # mu_layer
    wlv, blv = linear(k3, 64, 10)   # logvar_layer
    wd1, bd1 = linear(k4, 10, 64)   # decoder Linear(10, 64)
    wd2, bd2 = linear(k5, 64, 125)  # decoder Linear(64, 125)
    return (w1, b1, wmu, bmu, wlv, blv, wd1, bd1, wd2, bd2)


if __name__ == "__main__":
    key = jax.random.PRNGKey(0)
    k_params, k_x, k_eps = jax.random.split(key, 3)

    params = init_params(k_params)
    prepared = prepare_params(params)   # one-time weight cast (not per forward call)

    B = 8
    x = jax.random.normal(k_x, (B, D_IN), jnp.float32)
    # The nn.Module draws eps = randn_like(...) inside forward; here the noise is passed
    # in explicitly so the run is deterministic and checkable against a pure-JAX
    # reference.  (It could equally be generated in-kernel via pltpu.prng_seed/
    # pltpu.stateful_normal, which would also remove the tiny eps read.)
    eps = jax.random.normal(k_eps, (B, D_LAT), jnp.float32)

    decoded, mu, logvar = autoencoder_forward(x, eps, prepared)
    jax.block_until_ready((decoded, mu, logvar))

    # Pure-JAX f32 reference (kernel uses bf16 weights / MXU matmuls with f32 accumulation).
    (w1, b1, wmu, bmu, wlv, blv, wd1, bd1, wd2, bd2) = params
    h_ref = jnp.maximum(x @ w1 + b1, 0.0)
    mu_ref = h_ref @ wmu + bmu
    lv_ref = h_ref @ wlv + blv
    z_ref = mu_ref + eps * jnp.exp(0.5 * lv_ref)
    hd_ref = jnp.maximum(z_ref @ wd1 + bd1, 0.0)
    dec_ref = hd_ref @ wd2 + bd2

    assert decoded.shape == (B, D_IN) and mu.shape == (B, D_LAT) and logvar.shape == (B, D_LAT)
    assert jnp.allclose(mu, mu_ref, atol=3e-2, rtol=3e-2)
    assert jnp.allclose(logvar, lv_ref, atol=3e-2, rtol=3e-2)
    assert jnp.allclose(decoded, dec_ref, atol=3e-2, rtol=3e-2)

    print("KERNEL_OK")
</pallas_src>

<mosaic_0001>
module attributes {stable_mosaic.version = 11 : i64} {
  func.func @vae_forward_kernel(%arg0: i32, %arg1: memref<8x125xf32, #tpu.memory_space<vmem>>, %arg2: memref<8x10xf32, #tpu.memory_space<vmem>>, %arg3: memref<125x64xbf16, #tpu.memory_space<vmem>>, %arg4: memref<1x64xf32, #tpu.memory_space<vmem>>, %arg5: memref<64x10xbf16, #tpu.memory_space<vmem>>, %arg6: memref<1x10xf32, #tpu.memory_space<vmem>>, %arg7: memref<64x10xbf16, #tpu.memory_space<vmem>>, %arg8: memref<1x10xf32, #tpu.memory_space<vmem>>, %arg9: memref<10x64xbf16, #tpu.memory_space<vmem>>, %arg10: memref<1x64xf32, #tpu.memory_space<vmem>>, %arg11: memref<64x125xbf16, #tpu.memory_space<vmem>>, %arg12: memref<1x125xf32, #tpu.memory_space<vmem>>, %arg13: memref<8x125xf32, #tpu.memory_space<vmem>>, %arg14: memref<8x10xf32, #tpu.memory_space<vmem>>, %arg15: memref<8x10xf32, #tpu.memory_space<vmem>>) attributes {dimension_semantics = [#tpu.dimension_semantics<parallel>], iteration_bounds = array<i64: 1>, scalar_prefetch = 0 : i64, scratch_operands = 0 : i64, tpu.core_type = #tpu.core_type<tc>, window_params = [{transform_indices = @transform_0, window_bounds = array<i64: 8, 125>}, {transform_indices = @transform_1, window_bounds = array<i64: 8, 10>}, {pipeline_mode = #tpu.pipeline_mode<synchronous>, transform_indices = @transform_2, window_bounds = array<i64: 125, 64>}, {pipeline_mode = #tpu.pipeline_mode<synchronous>, transform_indices = @transform_3, window_bounds = array<i64: 1, 64>}, {pipeline_mode = #tpu.pipeline_mode<synchronous>, transform_indices = @transform_4, window_bounds = array<i64: 64, 10>}, {pipeline_mode = #tpu.pipeline_mode<synchronous>, transform_indices = @transform_5, window_bounds = array<i64: 1, 10>}, {pipeline_mode = #tpu.pipeline_mode<synchronous>, transform_indices = @transform_6, window_bounds = array<i64: 64, 10>}, {pipeline_mode = #tpu.pipeline_mode<synchronous>, transform_indices = @transform_7, window_bounds = array<i64: 1, 10>}, {pipeline_mode = #tpu.pipeline_mode<synchronous>, transform_indices = @transform_8, window_bounds = array<i64: 10, 64>}, {pipeline_mode = #tpu.pipeline_mode<synchronous>, transform_indices = @transform_9, window_bounds = array<i64: 1, 64>}, {pipeline_mode = #tpu.pipeline_mode<synchronous>, transform_indices = @transform_10, window_bounds = array<i64: 64, 125>}, {pipeline_mode = #tpu.pipeline_mode<synchronous>, transform_indices = @transform_11, window_bounds = array<i64: 1, 125>}, {transform_indices = @transform_12, window_bounds = array<i64: 8, 125>}, {transform_indices = @transform_13, window_bounds = array<i64: 8, 10>}, {transform_indices = @transform_14, window_bounds = array<i64: 8, 10>}]} {
    %c0 = arith.constant 0 : index
    %c0_0 = arith.constant 0 : index
    %0 = vector.load %arg1[%c0, %c0_0] : memref<8x125xf32, #tpu.memory_space<vmem>>, vector<8x125xf32>
    %1 = arith.truncf %0 : vector<8x125xf32> to vector<8x125xbf16>
    %c0_1 = arith.constant 0 : index
    %c0_2 = arith.constant 0 : index
    %2 = vector.load %arg3[%c0_1, %c0_2] : memref<125x64xbf16, #tpu.memory_space<vmem>>, vector<125x64xbf16>
    %cst = arith.constant dense<0.000000e+00> : vector<8x64xf32>
    %3 = tpu.matmul %1, %2, %cst {dimension_numbers = #tpu.dot_dimension_numbers<[1], [0], [0], [1], [0, 0, 1, 1], [], []>} : vector<8x125xbf16>, vector<125x64xbf16>, vector<8x64xf32> -> vector<8x64xf32>
    %c0_3 = arith.constant 0 : index
    %c0_4 = arith.constant 0 : index
    %4 = vector.load %arg4[%c0_3, %c0_4] : memref<1x64xf32, #tpu.memory_space<vmem>>, vector<1x64xf32>
    %5 = vector.broadcast %4 : vector<1x64xf32> to vector<8x64xf32>
    %6 = arith.addf %3, %5 : vector<8x64xf32>
    %cst_5 = arith.constant 0.000000e+00 : f32
    %7 = vector.broadcast %cst_5 : f32 to vector<8x64xf32>
    %8 = arith.maximumf %6, %7 : vector<8x64xf32>
    %9 = arith.truncf %8 : vector<8x64xf32> to vector<8x64xbf16>
    %c0_6 = arith.constant 0 : index
    %c0_7 = arith.constant 0 : index
    %10 = vector.load %arg5[%c0_6, %c0_7] : memref<64x10xbf16, #tpu.memory_space<vmem>>, vector<64x10xbf16>
    %cst_8 = arith.constant dense<0.000000e+00> : vector<8x10xf32>
    %11 = tpu.matmul %9, %10, %cst_8 {dimension_numbers = #tpu.dot_dimension_numbers<[1], [0], [0], [1], [0, 0, 1, 1], [], []>} : vector<8x64xbf16>, vector<64x10xbf16>, vector<8x10xf32> -> vector<8x10xf32>
    %c0_9 = arith.constant 0 : index
    %c0_10 = arith.constant 0 : index
    %12 = vector.load %arg6[%c0_9, %c0_10] : memref<1x10xf32, #tpu.memory_space<vmem>>, vector<1x10xf32>
    %13 = vector.broadcast %12 : vector<1x10xf32> to vector<8x10xf32>
    %14 = arith.addf %11, %13 : vector<8x10xf32>
    %c0_11 = arith.constant 0 : index
    %c0_12 = arith.constant 0 : index
    %15 = vector.load %arg7[%c0_11, %c0_12] : memref<64x10xbf16, #tpu.memory_space<vmem>>, vector<64x10xbf16>
    %cst_13 = arith.constant dense<0.000000e+00> : vector<8x10xf32>
    %16 = tpu.matmul %9, %15, %cst_13 {dimension_numbers = #tpu.dot_dimension_numbers<[1], [0], [0], [1], [0, 0, 1, 1], [], []>} : vector<8x64xbf16>, vector<64x10xbf16>, vector<8x10xf32> -> vector<8x10xf32>
    %c0_14 = arith.constant 0 : index
    %c0_15 = arith.constant 0 : index
    %17 = vector.load %arg8[%c0_14, %c0_15] : memref<1x10xf32, #tpu.memory_space<vmem>>, vector<1x10xf32>
    %18 = vector.broadcast %17 : vector<1x10xf32> to vector<8x10xf32>
    %19 = arith.addf %16, %18 : vector<8x10xf32>
    %c0_16 = arith.constant 0 : index
    %c0_17 = arith.constant 0 : index
    %20 = vector.load %arg2[%c0_16, %c0_17] : memref<8x10xf32, #tpu.memory_space<vmem>>, vector<8x10xf32>
    %cst_18 = arith.constant 5.000000e-01 : f32
    %21 = vector.broadcast %cst_18 : f32 to vector<8x10xf32>
    %22 = arith.mulf %21, %19 : vector<8x10xf32>
    %23 = math.exp %22 : vector<8x10xf32>
    %24 = arith.mulf %20, %23 : vector<8x10xf32>
    %25 = arith.addf %14, %24 : vector<8x10xf32>
    %26 = arith.truncf %25 : vector<8x10xf32> to vector<8x10xbf16>
    %c0_19 = arith.constant 0 : index
    %c0_20 = arith.constant 0 : index
    %27 = vector.load %arg9[%c0_19, %c0_20] : memref<10x64xbf16, #tpu.memory_space<vmem>>, vector<10x64xbf16>
    %cst_21 = arith.constant dense<0.000000e+00> : vector<8x64xf32>
    %28 = tpu.matmul %26, %27, %cst_21 {dimension_numbers = #tpu.dot_dimension_numbers<[1], [0], [0], [1], [0, 0, 1, 1], [], []>} : vector<8x10xbf16>, vector<10x64xbf16>, vector<8x64xf32> -> vector<8x64xf32>
    %c0_22 = arith.constant 0 : index
    %c0_23 = arith.constant 0 : index
    %29 = vector.load %arg10[%c0_22, %c0_23] : memref<1x64xf32, #tpu.memory_space<vmem>>, vector<1x64xf32>
    %30 = vector.broadcast %29 : vector<1x64xf32> to vector<8x64xf32>
    %31 = arith.addf %28, %30 : vector<8x64xf32>
    %cst_24 = arith.constant 0.000000e+00 : f32
    %32 = vector.broadcast %cst_24 : f32 to vector<8x64xf32>
    %33 = arith.maximumf %31, %32 : vector<8x64xf32>
    %34 = arith.truncf %33 : vector<8x64xf32> to vector<8x64xbf16>
    %c0_25 = arith.constant 0 : index
    %c0_26 = arith.constant 0 : index
    %35 = vector.load %arg11[%c0_25, %c0_26] : memref<64x125xbf16, #tpu.memory_space<vmem>>, vector<64x125xbf16>
    %cst_27 = arith.constant dense<0.000000e+00> : vector<8x125xf32>
    %36 = tpu.matmul %34, %35, %cst_27 {dimension_numbers = #tpu.dot_dimension_numbers<[1], [0], [0], [1], [0, 0, 1, 1], [], []>} : vector<8x64xbf16>, vector<64x125xbf16>, vector<8x125xf32> -> vector<8x125xf32>
    %c0_28 = arith.constant 0 : index
    %c0_29 = arith.constant 0 : index
    %37 = vector.load %arg12[%c0_28, %c0_29] : memref<1x125xf32, #tpu.memory_space<vmem>>, vector<1x125xf32>
    %38 = vector.broadcast %37 : vector<1x125xf32> to vector<8x125xf32>
    %39 = arith.addf %36, %38 : vector<8x125xf32>
    %c0_30 = arith.constant 0 : index
    %c0_31 = arith.constant 0 : index
    %40 = vector.load %arg13[%c0_30, %c0_31] : memref<8x125xf32, #tpu.memory_space<vmem>>, vector<8x125xf32>
    tpu.vector_store %arg13[%c0_30, %c0_31], %39 {strides = array<i32>} : memref<8x125xf32, #tpu.memory_space<vmem>>, vector<8x125xf32>,
    %c0_32 = arith.constant 0 : index
    %c0_33 = arith.constant 0 : index
    %41 = vector.load %arg14[%c0_32, %c0_33] : memref<8x10xf32, #tpu.memory_space<vmem>>, vector<8x10xf32>
    tpu.vector_store %arg14[%c0_32, %c0_33], %14 {strides = array<i32>} : memref<8x10xf32, #tpu.memory_space<vmem>>, vector<8x10xf32>,
    %c0_34 = arith.constant 0 : index
    %c0_35 = arith.constant 0 : index
    %42 = vector.load %arg15[%c0_34, %c0_35] : memref<8x10xf32, #tpu.memory_space<vmem>>, vector<8x10xf32>
    tpu.vector_store %arg15[%c0_34, %c0_35], %19 {strides = array<i32>} : memref<8x10xf32, #tpu.memory_space<vmem>>, vector<8x10xf32>,
    return
  }
  func.func @transform_0(%arg0: i32) -> (i32, i32) {
    %c0_i32 = arith.constant 0 : i32
    %c0_i32_0 = arith.constant 0 : i32
    return %arg0, %c0_i32 : i32, i32
  }
  func.func @transform_1(%arg0: i32) -> (i32, i32) {
    %c0_i32 = arith.constant 0 : i32
    %c0_i32_0 = arith.constant 0 : i32
    return %arg0, %c0_i32 : i32, i32
  }
  func.func @transform_2(%arg0: i32) -> (i32, i32) {
    %c0_i32 = arith.constant 0 : i32
    %c0_i32_0 = arith.constant 0 : i32
    %c0_i32_1 = arith.constant 0 : i32
    return %c0_i32, %c0_i32_0 : i32, i32
  }
  func.func @transform_3(%arg0: i32) -> (i32, i32) {
    %c0_i32 = arith.constant 0 : i32
    %c0_i32_0 = arith.constant 0 : i32
    %c0_i32_1 = arith.constant 0 : i32
    return %c0_i32, %c0_i32_0 : i32, i32
  }
  func.func @transform_4(%arg0: i32) -> (i32, i32) {
    %c0_i32 = arith.constant 0 : i32
    %c0_i32_0 = arith.constant 0 : i32
    %c0_i32_1 = arith.constant 0 : i32
    return %c0_i32, %c0_i32_0 : i32, i32
  }
  func.func @transform_5(%arg0: i32) -> (i32, i32) {
    %c0_i32 = arith.constant 0 : i32
    %c0_i32_0 = arith.constant 0 : i32
    %c0_i32_1 = arith.constant 0 : i32
    return %c0_i32, %c0_i32_0 : i32, i32
  }
  func.func @transform_6(%arg0: i32) -> (i32, i32) {
    %c0_i32 = arith.constant 0 : i32
    %c0_i32_0 = arith.constant 0 : i32
    %c0_i32_1 = arith.constant 0 : i32
    return %c0_i32, %c0_i32_0 : i32, i32
  }
  func.func @transform_7(%arg0: i32) -> (i32, i32) {
    %c0_i32 = arith.constant 0 : i32
    %c0_i32_0 = arith.constant 0 : i32
    %c0_i32_1 = arith.constant 0 : i32
    return %c0_i32, %c0_i32_0 : i32, i32
  }
  func.func @transform_8(%arg0: i32) -> (i32, i32) {
    %c0_i32 = arith.constant 0 : i32
    %c0_i32_0 = arith.constant 0 : i32
    %c0_i32_1 = arith.constant 0 : i32
    return %c0_i32, %c0_i32_0 : i32, i32
  }
  func.func @transform_9(%arg0: i32) -> (i32, i32) {
    %c0_i32 = arith.constant 0 : i32
    %c0_i32_0 = arith.constant 0 : i32
    %c0_i32_1 = arith.constant 0 : i32
    return %c0_i32, %c0_i32_0 : i32, i32
  }
  func.func @transform_10(%arg0: i32) -> (i32, i32) {
    %c0_i32 = arith.constant 0 : i32
    %c0_i32_0 = arith.constant 0 : i32
    %c0_i32_1 = arith.constant 0 : i32
    return %c0_i32, %c0_i32_0 : i32, i32
  }
  func.func @transform_11(%arg0: i32) -> (i32, i32) {
    %c0_i32 = arith.constant 0 : i32
    %c0_i32_0 = arith.constant 0 : i32
    %c0_i32_1 = arith.constant 0 : i32
    return %c0_i32, %c0_i32_0 : i32, i32
  }
  func.func @transform_12(%arg0: i32) -> (i32, i32) {
    %c0_i32 = arith.constant 0 : i32
    %c0_i32_0 = arith.constant 0 : i32
    return %arg0, %c0_i32 : i32, i32
  }
  func.func @transform_13(%arg0: i32) -> (i32, i32) {
    %c0_i32 = arith.constant 0 : i32
    %c0_i32_0 = arith.constant 0 : i32
    return %arg0, %c0_i32 : i32, i32
  }
  func.func @transform_14(%arg0: i32) -> (i32, i32) {
    %c0_i32 = arith.constant 0 : i32
    %c0_i32_0 = arith.constant 0 : i32
    return %arg0, %c0_i32 : i32, i32
  }
}

</mosaic_0001>

<bundles_post_ra>
// kernel: tpu_custom_call.1
= control target key start
LH: loop header
LB: loop body
LE: loop exit
PB: predicated region body
PF: predicated region fallthrough
CT: control target
= control target key end

     0   :  { %20 = vsyncpa [#allocation3], 0  ;;  %vm123_vm0 = vcmask 1045504   ;;  %v743_v0 = vmov 0.0   ;;  %vm124_vm1 = vcmask 1046528   ;;  %v744_v2 = vmov 65535   ;;  %s956_s0 = inlined_call_operand.vmem [shape: f32[8,125], index: 0, kind: input, shape index: {}]   ;;  %s957_s1 = inlined_call_operand.vmem [shape: f32[8,10], index: 1, kind: input, shape index: {}]   ;;  %s958_s2 = inlined_call_operand.vmem [shape: bf16[125,64], index: 2, kind: input, shape index: {}]   ;;  %s959_s3 = inlined_call_operand.vmem [shape: f32[1,64], index: 3, kind: input, shape index: {}]   ;;  %s960_s4 = inlined_call_operand.vmem [shape: bf16[64,10], index: 4, kind: input, shape index: {}]   ;;  %s961_s5 = inlined_call_operand.vmem [shape: f32[1,10], index: 5, kind: input, shape index: {}]   ;;  %s962_s6 = inlined_call_operand.vmem [shape: bf16[64,10], index: 6, kind: input, shape index: {}]   ;;  %s963_s7 = inlined_call_operand.vmem [shape: f32[1,10], index: 7, kind: input, shape index: {}]   ;;  %s964_s8 = inlined_call_operand.vmem [shape: bf16[10,64], index: 8, kind: input, shape index: {}]   ;;  %s965_s9 = inlined_call_operand.vmem [shape: f32[1,64], index: 9, kind: input, shape index: {}]   ;;  %s966_s10 = inlined_call_operand.vmem [shape: bf16[64,125], index: 10, kind: input, shape index: {}]   ;;  %s967_s11 = inlined_call_operand.vmem [shape: f32[1,125], index: 11, kind: input, shape index: {}]   ;;  %s968_s12 = inlined_call_operand.hbm [shape: f32[8,125], index: 12, kind: output, shape index: {0}]   ;;  %s969_s13 = inlined_call_operand.hbm [shape: f32[8,10], index: 13, kind: output, shape index: {1}]   ;;  %s970_s14 = inlined_call_operand.hbm [shape: f32[8,10], index: 14, kind: output, shape index: {2}]  }
   0x1   :  { %588 = vmatprep.subr.bf16.mxu0 %v743_v0  ;;  %v656_v1 = vld [vmem:[%s958_s2 + $0x38] sm:$0x7f]   ;;  %608 = vmatprep.subr.bf16.mxu1 %v743_v0  ;;  %v125_v3 = vsel %vm123_vm0, 4294967295, %v744_v2  ;;  %vm745_vm2 = vmmov 0   ;;  %v657_v6 = vld [vmem:[%s958_s2 + $0x30] sm:$0xff]   ;;  %v658_v8 = vld [vmem:[%s958_s2 + $0x28] sm:$0xff]  }
   0x2   :  { %v126_v4 = vsel %vm124_vm1, %v125_v3, 0  ;;  %604 = vmatprep.mubr.msk.bf16.mxu0 %vm745_vm2, %v743_v0  ;;  %616 = vmatprep.mubr.msk.bf16.mxu1 %vm745_vm2, %v743_v0  ;;  %v664_v7 = vld [vmem:[%s960_s4 + $0x18] sm:$0xff]   ;;  %v665_v9 = vld [vmem:[%s960_s4 + $0x10] sm:$0xff]   ;;  %v659_v10 = vld [vmem:[%s958_s2 + $0x20] sm:$0xff]  }
   0x3   :  { %v128_v5 = vand.u32 %v656_v1, %v126_v4  ;;  %609 = vmatpush3.bf16.msra.mxu1 %v664_v7  ;;  %v666_v11 = vld [vmem:[%s960_s4 + $0x8] sm:$0xff]   ;;  %v660_v12 = vld [vmem:[%s958_s2 + $0x18] sm:$0xff]  }
   0x4   :  { %610 = vmatprep.subr.bf16.mxu1 %v743_v0 }
   0x5   :  { %589 = vmatpush3.bf16.msra.mxu0 %v128_v5 }
   0x6   :  { %590 = vmatprep.subr.bf16.mxu0 %v743_v0 }
   0x7   :  { %611 = vmatpush3.bf16.msra.mxu1 %v665_v9 }
   0x8   :  { %612 = vmatprep.subr.bf16.mxu1 %v743_v0 }
   0x9   :  { %591 = vmatpush3.bf16.msra.mxu0 %v657_v6 }
   0xa   :  { %592 = vmatprep.subr.bf16.mxu0 %v743_v0 }
   0xb   :  { %613 = vmatpush3.bf16.msra.mxu1 %v666_v11 }
   0xd   :  { %593 = vmatpush3.bf16.msra.mxu0 %v658_v8 }
   0xe   :  { %594 = vmatprep.subr.bf16.mxu0 %v743_v0 }
  0x11   :  { %595 = vmatpush3.bf16.msra.mxu0 %v659_v10 }
  0x12   :  { %596 = vmatprep.subr.bf16.mxu0 %v743_v0 }
  0x13   :  { %21 = vsyncpa [#allocation5], 0  ;;  %614 = vmatprep.subr.bf16.mxu1 %v743_v0  ;;  %v661_v13 = vld [vmem:[%s958_s2 + $0x10] sm:$0xff]   ;;  %v662_v14 = vld [vmem:[%s958_s2 + $0x8] sm:$0xff]   ;;  %vm119_vm3 = vcmask 1022976   ;;  %vm211_vm4 = vcmask 523264  }
  0x14   :  { %v663_v15 = vld [vmem:[%s958_s2] sm:$0xff]   ;;  %v668_v25 = vld [vmem:[%s962_s6 + $0x18] sm:$0xff]   ;;  %v669_v28 = vld [vmem:[%s962_s6 + $0x10] sm:$0xff]   ;;  %vm359_vm5 = vcmask 1044480   ;;  %vm355_vm6 = vcmask 80896   ;;  %s746_s24 = smov [#allocation4]  }
  0x15   :  { %597 = vmatpush3.bf16.msra.mxu0 %v660_v12  ;;  %v47_v16 = vld [vmem:[%s956_s0] sm:$0xff]  ;;  %v670_v29 = vld [vmem:[%s962_s6 + $0x8] sm:$0xff]   ;;  %v673_v33 = vld [vmem:[%s966_s10 + $0x18] sm:$0xff]  }
  0x16   :  { %598 = vmatprep.subr.bf16.mxu0 %v743_v0  ;;  %v48_v17 = vpack.c.bf16 %v47_v16, %v47_v16  ;;  %v667_v18 = vld [vmem:[%s960_s4] sm:$0xff]   ;;  %v674_v34 = vld [vmem:[%s966_s10 + $0x10] sm:$0xff]   ;;  %v675_v54 = vld [vmem:[%s966_s10 + $0x8] sm:$0xff]   ;;  %s506_s4 = sshll.u32 %s746_s24, 4  ;;  %s507_s4 = int_to_ptr.vmem [resolvable:$true] %s506_s4 }
  0x17   :  { %615 = vmatpush3.bf16.msra.mxu1 %v667_v18  ;;  %v531_v19 = vld [vmem:[%s959_s3] ss:$0 sm:$0xff]  ;;  %s679_s25 = scalar_lea.vmem %s507_s4, 128  ;;  %p684_p1 = scmp.lt.s32.totalorder %s507_s4, %s507_s4 }
  0x18   :  { %620 = vmatprep.subr.bf16.mxu1 %v743_v0  ;;  %v671_v30 = vld [vmem:[%s962_s6] sm:$0xff]   ;;  %p680_p0 = scmp.ne.s32.totalorder %s507_s4, %s679_s25  ;;  %p685_p2 = scmp.lt.s32.totalorder %s679_s25, %s679_s25 }
  0x19   :  { %599 = vmatpush3.bf16.msra.mxu0 %v661_v13  ;;  %v672_v31 = vld [vmem:[%s964_s8] sm:$0x1f]  }
  0x1a   :  { %600 = vmatprep.subr.bf16.mxu0 %v743_v0  ;;  %v361_v32 = vsel %vm359_vm5, %v672_v31, 0  ;;  %v541_v35 = vld [vmem:[%s961_s5] ss:$0 sm:$0xff]  ;;  %p686_p3 = por %p685_p2, %p684_p1 }
  0x1b   :  { %v547_v41 = vld [vmem:[%s963_s7] ss:$0 sm:$0xff] }
  0x1c   :  { %v334_v49 = vld [vmem:[%s957_s1] sm:$0xff]  ;;  %p687_p4 = pnand %p686_p3, %p680_p0 }
  0x1d   :  { %601 = vmatpush3.bf16.msra.mxu0 %v662_v14  ;;  %v676_v55 = vld [vmem:[%s966_s10] sm:$0xff]  }
  0x1e   :  { %602 = vmatprep.subr.bf16.mxu0 %v743_v0  ;;  %v553_v56 = vld [vmem:[%s965_s9] ss:$0 sm:$0xff] }
  0x21   :  { %603 = vmatpush3.bf16.msra.mxu0 %v663_v15 }
  0x22   :  { %632 = vmatprep.subr.bf16.mxu0 %v743_v0 }
  0x24   :  { %605 = vmatmul.mubr.msk.bf16.vlgmr.msra.gmra.mxu0 %vm119_vm3, %v48_v17 }
  0x25   :  { %634 = vmatprep.mubr.msk.bf16.mxu0 %vm745_vm2, %v743_v0  ;;  %633 = vmatpush3.bf16.msra.mxu0 %v361_v32 }
  0xe4   :  { %v164_v20 = vpop.f32.mrf.mxu0 }
  0xe5   :  { %v165_v21 = vadd.f32 %v531_v19, %v164_v20 }
  0xe6   :  { %v606_v22 = vpop.f32.mrf.mxu0 }
  0xe7   :  { %v170_v23 = vmax.f32 %v165_v21, 0.0 }
  0xe8   :  { %v167_v24 = vpop.f32.mrf.mxu0 }
  0xe9   :  { %v171_v26 = vpack.c.bf16 %v170_v23, %v170_v23 }
  0xea   :  { %v607_v27 = vpop.f32.mrf.mxu0 }
  0xeb   :  { %617 = vmatmul.mubr.msk.bf16.vlgmr.msra.gmra.mxu1 %vm211_vm4, %v171_v26 }
  0xec   :  { %621 = vmatpush3.bf16.msra.mxu1 %v668_v25  ;;  %628 = vmatprep.mubr.msk.bf16.mxu1 %vm745_vm2, %v743_v0 }
  0xed   :  { %622 = vmatprep.subr.bf16.mxu1 %v743_v0 }
  0xf0   :  { %623 = vmatpush3.bf16.msra.mxu1 %v669_v28 }
  0xf1   :  { %624 = vmatprep.subr.bf16.mxu1 %v743_v0 }
  0xf4   :  { %625 = vmatpush3.bf16.msra.mxu1 %v670_v29 }
  0xf5   :  { %626 = vmatprep.subr.bf16.mxu1 %v743_v0 }
  0xf8   :  { %627 = vmatpush3.bf16.msra.mxu1 %v671_v30 }
  0xf9   :  { %638 = vmatprep.subr.bf16.mxu1 %v743_v0 }
  0xfb   :  { %629 = vmatmul.mubr.msk.bf16.vlgmr.msra.gmra.mxu1 %vm211_vm4, %v171_v26 }
  0xfc   :  { %646 = vmatprep.mubr.msk.bf16.mxu1 %vm745_vm2, %v743_v0  ;;  %639 = vmatpush3.bf16.msra.mxu1 %v673_v33 }
  0xfd   :  { %640 = vmatprep.subr.bf16.mxu1 %v743_v0 }
 0x100   :  { %641 = vmatpush3.bf16.msra.mxu1 %v674_v34 }
 0x101   :  { %642 = vmatprep.subr.bf16.mxu1 %v743_v0 }
 0x104   :  { %643 = vmatpush3.bf16.msra.mxu1 %v675_v54 }
 0x105   :  { %644 = vmatprep.subr.bf16.mxu1 %v743_v0 }
 0x108   :  { %645 = vmatpush3.bf16.msra.mxu1 %v676_v55 }
 0x1ab   :  { %v249_v36 = vpop.f32.mrf.mxu1 }
 0x1ac   :  { %v250_v37 = vadd.f32 %v541_v35, %v249_v36 }
 0x1ad   :  { %v618_v38 = vpop.f32.mrf.mxu1 }
 0x1ae   :  { %488 = vst.msk [vmem:[#allocation4] sm:$0xff] %vm355_vm6, %v250_v37 }
 0x1af   :  { %v252_v39 = vpop.f32.mrf.mxu1 }
 0x1b1   :  { %v619_v40 = vpop.f32.mrf.mxu1 }
 0x1bb   :  { %v328_v42 = vpop.f32.mrf.mxu1 }
 0x1bc   :  { %v329_v43 = vadd.f32 %v547_v41, %v328_v42 }
 0x1bd   :  { %v630_v44 = vpop.f32.mrf.mxu1 }
 0x1be   :  { %v335_v45 = vmul.f32 0.5, %v329_v43  ;;  %489 = vst.msk [vmem:[#allocation6] sm:$0xff] %vm355_vm6, %v329_v43 }
 0x1bf   :  { %v331_v46 = vpop.f32.mrf.mxu1 }
 0x1c0   :  { %v336_v47 = vmul.f32 1.442695, %v335_v45 }
 0x1c1   :  { %v631_v48 = vpop.f32.mrf.mxu1 }
 0x1c2   :  { %677 = vpow2.f32 %v336_v47 }
 0x1cf   :  { %v678_v50 = vpop.eup %677 }
 0x1d0   :  { %v338_v51 = vmul.f32 %v678_v50, %v334_v49 }
 0x1d2   :  { %v339_v52 = vadd.f32 %v338_v51, %v250_v37 }
 0x1d4   :  { %v340_v53 = vpack.c.bf16 %v339_v52, %v339_v52 }
 0x1d6   :  { %635 = vmatmul.mubr.msk.bf16.vlgmr.msra.gmra.mxu0 %vm355_vm6, %v340_v53 }
 0x296   :  { %v397_v57 = vpop.f32.mrf.mxu0 }
 0x297   :  { %v398_v58 = vadd.f32 %v553_v56, %v397_v57 }
 0x298   :  { %v636_v59 = vpop.f32.mrf.mxu0 }
 0x299   :  { %v403_v60 = vmax.f32 %v398_v58, 0.0 }
 0x29a   :  { %v400_v61 = vpop.f32.mrf.mxu0 }
 0x29b   :  { %v404_v62 = vpack.c.bf16 %v403_v60, %v403_v60 }
 0x29c   :  { %v637_v63 = vpop.f32.mrf.mxu0 }
 0x29d   :  { %647 = vmatmul.mubr.msk.bf16.vlgmr.msra.gmra.mxu1 %vm211_vm4, %v404_v62 }
 0x29e   :  { %690 = shalt.err (!%p687_p4)
}
 0x29f   :  { %509 = dma.vmem_to_hbm [thread:$0]  %s507_s4, 128, %s969_s13, [#allocation5]  }
 0x2a0   :  { %s747_s3 = smov [#allocation6]  }
 0x2a1   :  { %s516_s26 = sshll.u32 %s747_s3, 4  ;;  %s517_s26 = int_to_ptr.vmem [resolvable:$true] %s516_s26 }
 0x2a2   :  { %s699_s27 = scalar_lea.vmem %s517_s26, 128  ;;  %p704_p6 = scmp.lt.s32.totalorder %s517_s26, %s517_s26 }
 0x2a3   :  { %p700_p5 = scmp.ne.s32.totalorder %s517_s26, %s699_s27  ;;  %p705_p7 = scmp.lt.s32.totalorder %s699_s27, %s699_s27 }
 0x2a5   :  { %p706_p8 = por %p705_p7, %p704_p6 }
 0x2a7   :  { %p707_p9 = pnand %p706_p8, %p700_p5 }
 0x2a9   :  { %710 = shalt.err (!%p707_p9)
}
 0x2aa   :  { %519 = dma.vmem_to_hbm [thread:$0]  %s517_s26, 128, %s970_s14, [#allocation5]   ;;  %v556_v0 = vld [vmem:[%s967_s11] ss:$0 sm:$0xff] }
 0x2ab   :  { %s748_s16 = smov [#allocation2]  }
 0x2ac   :  { %s496_s13 = sshll.u32 %s748_s16, 4  ;;  %s497_s13 = int_to_ptr.vmem [resolvable:$true] %s496_s13 }
 0x2ad   :  { %s719_s6 = scalar_lea.vmem %s497_s13, 128  ;;  %p724_p11 = scmp.lt.s32.totalorder %s497_s13, %s497_s13 }
 0x2ae   :  { %p720_p10 = scmp.ne.s32.totalorder %s497_s13, %s719_s6  ;;  %p725_p12 = scmp.lt.s32.totalorder %s719_s6, %s719_s6 }
 0x2b0   :  { %p726_p13 = por %p725_p12, %p724_p11 }
 0x2b2   :  { %p727_p0 = pnand %p726_p13, %p720_p10 }
 0x35d   :  { %v481_v1 = vpop.f32.mrf.mxu1 }
 0x35e   :  { %v482_v2 = vadd.f32 %v556_v0, %v481_v1 }
 0x35f   :  { %v648_v3 = vpop.f32.mrf.mxu1 }
 0x360   :  { %487 = vst.msk [vmem:[#allocation2] sm:$0xff] %vm119_vm3, %v482_v2 }
 0x361   :  { %v484_v4 = vpop.f32.mrf.mxu1 }
 0x362   :  { %730 = shalt.err (!%p727_p0)
}
 0x363   :  { %499 = dma.vmem_to_hbm [thread:$0]  %s497_s13, 128, %s968_s12, [#allocation3]   ;;  %v649_v5 = vpop.f32.mrf.mxu1 }
 0x364   :  { %739 = dma.done.wait [#allocation3], 128  }
 0x365   :  { %740 = vsyncadd [#allocation3], 4294967168 }
 0x366   :  { %741 = dma.done.wait [#allocation5], 256  }
 0x367   :  { %742 = vsyncadd [#allocation5], 4294967040 }
 0x368   :  { %529 = vsyncpa [#allocation3], 1 }
 0x369   :  { %530 = vsyncpa [#allocation5], 1 }

</bundles_post_ra>
